<compile_context>
chip_gen: v7x
topology: tpu7x:2x2x1
jax: 0.10.0
libtpu: 0.0.40
codegen_flags: <defaults>
</compile_context>

<pallas_src>
import functools

import jax
import jax.numpy as jnp
from jax.experimental import pallas as pl
from jax.experimental.pallas import tpu as pltpu


def ffc_bn_act_kernel(p_ref, w_ref, gamma_ref, beta_ref, out_ref, *, M, eps):
    """Fused conv (as one matmul) + train-mode BatchNorm + ReLU.

    p_ref:     (K, M)     im2col patches, K = Cin*KH*KW, M = N*H*W
    w_ref:     (Cout, K)  fused convl2l|convl2g weights
    gamma_ref: (Cout, 1)  fused bn_l|bn_g scale
    beta_ref:  (Cout, 1)  fused bn_l|bn_g shift
    out_ref:   (Cout, M)  lane-dense output slab
    """
    # Conv: single MXU matmul, f32 accumulation inside the dot.
    y = jnp.dot(w_ref[...], p_ref[...],
                preferred_element_type=jnp.float32)          # (Cout, M)

    # BatchNorm2d (training semantics: biased batch stats over N*H*W), single
    # reduction pass: mean and E[x^2] together, var = E[x^2] - mean^2.
    inv_m = 1.0 / M
    mean = jnp.sum(y, axis=1, keepdims=True) * inv_m          # (Cout, 1)
    ex2 = jnp.sum(y * y, axis=1, keepdims=True) * inv_m       # (Cout, 1)
    var = ex2 - mean * mean

    # Fold affine into one scale/shift, then ReLU. One elementwise pass over y.
    scale = gamma_ref[...] * jax.lax.rsqrt(var + eps)         # (Cout, 1)
    shift = beta_ref[...] - mean * scale                      # (Cout, 1)
    out_ref[...] = jnp.maximum(y * scale + shift, 0.0)


@functools.partial(jax.jit, static_argnames=("out_cl", "eps"))
def ffc_bn_act_forward(x_nchw, w_oihw, gamma, beta, *, out_cl, eps=1e-5):
    """Runs the fused FFC_BN_ACT forward. Returns (x_l, x_g) in NCHW."""
    N, Cin, H, W = x_nchw.shape
    Cout, _, KH, KW = w_oihw.shape
    M = N * H * W
    K = Cin * KH * KW

    # Glue (stays in NCHW; fused by jit around the kernel):
    # reflect padding (PyTorch padding_mode='reflect', pad=1) ...
    xpad = jnp.pad(x_nchw, ((0, 0), (0, 0), (1, 1), (1, 1)), mode='reflect')
    # ... then im2col: P[ci*KH*KW + kh*KW + kw, n*H*W + h*W + w]
    #                    = xpad[n, ci, h + kh, w + kw]
    taps = [xpad[:, :, kh:kh + H, kw:kw + W]
            for kh in range(KH) for kw in range(KW)]          # each (N,Cin,H,W)
    p = jnp.stack(taps, axis=2)                               # (N, Cin, KH*KW, H, W)
    p = jnp.transpose(p, (1, 2, 0, 3, 4)).reshape(K, M)       # (K, M)

    # Weights OIHW -> (Cout, Cin*KH*KW): matches the (ci, kh, kw) K-ordering.
    w2d = w_oihw.reshape(Cout, K).astype(jnp.float32)
    gamma2d = gamma.reshape(Cout, 1).astype(jnp.float32)
    beta2d = beta.reshape(Cout, 1).astype(jnp.float32)

    kernel = functools.partial(ffc_bn_act_kernel, M=M, eps=eps)

    out = pl.pallas_call(
        kernel,
        out_shape=jax.ShapeDtypeStruct((Cout, M), jnp.float32),
        grid=(1,),
        in_specs=[
            pl.BlockSpec((K, M), lambda i: (0, 0)),
            pl.BlockSpec((Cout, K), lambda i: (0, 0)),
            pl.BlockSpec((Cout, 1), lambda i: (0, 0)),
            pl.BlockSpec((Cout, 1), lambda i: (0, 0)),
        ],
        out_specs=pl.BlockSpec((Cout, M), lambda i: (0, 0)),
        compiler_params=pltpu.CompilerParams(
            dimension_semantics=("arbitrary",)),
    )(p, w2d, gamma2d, beta2d)

    # (Cout, N*H*W) -> (N, Cout, H, W), then split local/global branches.
    out_nchw = jnp.transpose(out.reshape(Cout, N, H, W), (1, 0, 2, 3))
    return out_nchw[:, :out_cl], out_nchw[:, out_cl:]


def ffc_bn_act_reference(x_nchw, w_oihw, gamma, beta, *, out_cl, eps=1e-5):
    """Pure-JAX reference used only for a correctness check."""
    xpad = jnp.pad(x_nchw, ((0, 0), (0, 0), (1, 1), (1, 1)), mode='reflect')
    y = jax.lax.conv_general_dilated(
        xpad, w_oihw, window_strides=(1, 1), padding='VALID',
        dimension_numbers=('NCHW', 'OIHW', 'NCHW'))
    mean = jnp.mean(y, axis=(0, 2, 3), keepdims=True)
    var = jnp.mean((y - mean) ** 2, axis=(0, 2, 3), keepdims=True)
    y = (y - mean) * jax.lax.rsqrt(var + eps) * gamma.reshape(1, -1, 1, 1) \
        + beta.reshape(1, -1, 1, 1)
    y = jnp.maximum(y, 0.0)
    return y[:, :out_cl], y[:, out_cl:]


if __name__ == "__main__":
    # Module configuration.
    in_channels, out_channels, ksize = 4, 8, 3
    ratio_gin, ratio_gout = 0.0, 0.5
    out_cg = int(out_channels * ratio_gout)   # 4 (global/"spectral" output channels)
    out_cl = out_channels - out_cg            # 4 (local output channels)

    N, H, W = 2, 16, 16
    key = jax.random.PRNGKey(0)
    k_x, k_l2l, k_l2g, k_g, k_b = jax.random.split(key, 5)

    x = jax.random.normal(k_x, (N, in_channels, H, W), jnp.float32)

    # convl2l: (out_cl, in_cl, 3, 3), convl2g: (out_cg, in_cl, 3, 3); bias=False.
    w_l2l = jax.random.normal(k_l2l, (out_cl, in_channels, ksize, ksize), jnp.float32) * 0.1
    w_l2g = jax.random.normal(k_l2g, (out_cg, in_channels, ksize, ksize), jnp.float32) * 0.1
    w = jnp.concatenate([w_l2l, w_l2g], axis=0)            # fused (8, 4, 3, 3)

    # BatchNorm2d affine params for bn_l (out_cl) and bn_g (out_cg), fused.
    gamma = 1.0 + 0.1 * jax.random.normal(k_g, (out_channels,), jnp.float32)
    beta = 0.1 * jax.random.normal(k_b, (out_channels,), jnp.float32)

    # TODO(synk): SpectralTransform (convg2g) and the gated branch are not built
    # for this (ratio_gin=0, gated=False) configuration, so they are not emitted.
    # TODO(synk): train-mode BatchNorm running_mean/running_var updates are a
    # module side effect and are not produced here (forward output only).

    x_l, x_g = ffc_bn_act_forward(x, w, gamma, beta, out_cl=out_cl)
    x_l = jax.block_until_ready(x_l)
    x_g = jax.block_until_ready(x_g)

    r_l, r_g = ffc_bn_act_reference(x, w, gamma, beta, out_cl=out_cl)
    assert x_l.shape == (N, out_cl, H, W) and x_g.shape == (N, out_cg, H, W)
    assert jnp.allclose(x_l, r_l, atol=1e-4, rtol=1e-4)
    assert jnp.allclose(x_g, r_g, atol=1e-4, rtol=1e-4)

    print("KERNEL_OK")
</pallas_src>

<mosaic_0001>
module attributes {stable_mosaic.version = 11 : i64} {
  func.func @ffc_bn_act_kernel(%arg0: i32, %arg1: memref<36x512xf32, #tpu.memory_space<vmem>>, %arg2: memref<8x36xf32, #tpu.memory_space<vmem>>, %arg3: memref<8x1xf32, #tpu.memory_space<vmem>>, %arg4: memref<8x1xf32, #tpu.memory_space<vmem>>, %arg5: memref<8x512xf32, #tpu.memory_space<vmem>>) attributes {dimension_semantics = [#tpu.dimension_semantics<arbitrary>], iteration_bounds = array<i64: 1>, scalar_prefetch = 0 : i64, scratch_operands = 0 : i64, tpu.core_type = #tpu.core_type<tc>, window_params = [{pipeline_mode = #tpu.pipeline_mode<synchronous>, transform_indices = @transform_0, window_bounds = array<i64: 36, 512>}, {pipeline_mode = #tpu.pipeline_mode<synchronous>, transform_indices = @transform_1, window_bounds = array<i64: 8, 36>}, {pipeline_mode = #tpu.pipeline_mode<synchronous>, transform_indices = @transform_2, window_bounds = array<i64: 8, 1>}, {pipeline_mode = #tpu.pipeline_mode<synchronous>, transform_indices = @transform_3, window_bounds = array<i64: 8, 1>}, {pipeline_mode = #tpu.pipeline_mode<synchronous>, transform_indices = @transform_4, window_bounds = array<i64: 8, 512>}]} {
    %c0 = arith.constant 0 : index
    %c0_0 = arith.constant 0 : index
    %0 = vector.load %arg2[%c0, %c0_0] : memref<8x36xf32, #tpu.memory_space<vmem>>, vector<8x36xf32>
    %c0_1 = arith.constant 0 : index
    %c0_2 = arith.constant 0 : index
    %1 = vector.load %arg1[%c0_1, %c0_2] : memref<36x512xf32, #tpu.memory_space<vmem>>, vector<36x512xf32>
    %cst = arith.constant dense<0.000000e+00> : vector<8x512xf32>
    %2 = tpu.matmul %0, %1, %cst {dimension_numbers = #tpu.dot_dimension_numbers<[1], [0], [0], [1], [0, 0, 1, 1], [], []>} : vector<8x36xf32>, vector<36x512xf32>, vector<8x512xf32> -> vector<8x512xf32>
    %cst_3 = arith.constant dense<0.000000e+00> : vector<8xf32>
    %3 = vector.multi_reduction <add>, %2, %cst_3 [1] : vector<8x512xf32> to vector<8xf32>
    %4 = vector.shape_cast %3 : vector<8xf32> to vector<8x1xf32>
    %cst_4 = arith.constant 0.001953125 : f32
    %5 = vector.broadcast %cst_4 : f32 to vector<8x1xf32>
    %6 = arith.mulf %4, %5 : vector<8x1xf32>
    %7 = arith.mulf %2, %2 : vector<8x512xf32>
    %cst_5 = arith.constant dense<0.000000e+00> : vector<8xf32>
    %8 = vector.multi_reduction <add>, %7, %cst_5 [1] : vector<8x512xf32> to vector<8xf32>
    %9 = vector.shape_cast %8 : vector<8xf32> to vector<8x1xf32>
    %cst_6 = arith.constant 0.001953125 : f32
    %10 = vector.broadcast %cst_6 : f32 to vector<8x1xf32>
    %11 = arith.mulf %9, %10 : vector<8x1xf32>
    %12 = arith.mulf %6, %6 : vector<8x1xf32>
    %13 = arith.subf %11, %12 : vector<8x1xf32>
    %c0_7 = arith.constant 0 : index
    %c0_8 = arith.constant 0 : index
    %14 = vector.load %arg3[%c0_7, %c0_8] : memref<8x1xf32, #tpu.memory_space<vmem>>, vector<8x1xf32>
    %cst_9 = arith.constant 9.99999974E-6 : f32
    %15 = vector.broadcast %cst_9 : f32 to vector<8x1xf32>
    %16 = arith.addf %13, %15 : vector<8x1xf32>
    %17 = math.rsqrt %16 : vector<8x1xf32>
    %18 = arith.mulf %14, %17 : vector<8x1xf32>
    %c0_10 = arith.constant 0 : index
    %c0_11 = arith.constant 0 : index
    %19 = vector.load %arg4[%c0_10, %c0_11] : memref<8x1xf32, #tpu.memory_space<vmem>>, vector<8x1xf32>
    %20 = arith.mulf %6, %18 : vector<8x1xf32>
    %21 = arith.subf %19, %20 : vector<8x1xf32>
    %22 = vector.broadcast %18 : vector<8x1xf32> to vector<8x512xf32>
    %23 = arith.mulf %2, %22 : vector<8x512xf32>
    %24 = vector.broadcast %21 : vector<8x1xf32> to vector<8x512xf32>
    %25 = arith.addf %23, %24 : vector<8x512xf32>
    %cst_12 = arith.constant 0.000000e+00 : f32
    %26 = vector.broadcast %cst_12 : f32 to vector<8x512xf32>
    %27 = arith.maximumf %25, %26 : vector<8x512xf32>
    %c0_13 = arith.constant 0 : index
    %c0_14 = arith.constant 0 : index
    %28 = vector.load %arg5[%c0_13, %c0_14] : memref<8x512xf32, #tpu.memory_space<vmem>>, vector<8x512xf32>
    tpu.vector_store %arg5[%c0_13, %c0_14], %27 {strides = array<i32>} : memref<8x512xf32, #tpu.memory_space<vmem>>, vector<8x512xf32>,
    return
  }
  func.func @transform_0(%arg0: i32) -> (i32, i32) {
    %c0_i32 = arith.constant 0 : i32
    %c0_i32_0 = arith.constant 0 : i32
    %c0_i32_1 = arith.constant 0 : i32
    return %c0_i32, %c0_i32_0 : i32, i32
  }
  func.func @transform_1(%arg0: i32) -> (i32, i32) {
    %c0_i32 = arith.constant 0 : i32
    %c0_i32_0 = arith.constant 0 : i32
    %c0_i32_1 = arith.constant 0 : i32
    return %c0_i32, %c0_i32_0 : i32, i32
  }
  func.func @transform_2(%arg0: i32) -> (i32, i32) {
    %c0_i32 = arith.constant 0 : i32
    %c0_i32_0 = arith.constant 0 : i32
    %c0_i32_1 = arith.constant 0 : i32
    return %c0_i32, %c0_i32_0 : i32, i32
  }
  func.func @transform_3(%arg0: i32) -> (i32, i32) {
    %c0_i32 = arith.constant 0 : i32
    %c0_i32_0 = arith.constant 0 : i32
    %c0_i32_1 = arith.constant 0 : i32
    return %c0_i32, %c0_i32_0 : i32, i32
  }
  func.func @transform_4(%arg0: i32) -> (i32, i32) {
    %c0_i32 = arith.constant 0 : i32
    %c0_i32_0 = arith.constant 0 : i32
    %c0_i32_1 = arith.constant 0 : i32
    return %c0_i32, %c0_i32_0 : i32, i32
  }
}

</mosaic_0001>

<bundles_post_ra>
// kernel: ffc_bn_act_forward.1
= control target key start
LH: loop header
LB: loop body
LE: loop exit
PB: predicated region body
PF: predicated region fallthrough
CT: control target
= control target key end

     0   :  { %v280_v3 = vmov 0.0   ;;  %vm42_vm0 = vcmask 1043456   ;;  %vm38_vm1 = vcmask 293888   ;;  %v281_v44 = vmov 0   ;;  %s388_s0 = inlined_call_operand.vmem [shape: f32[36,512], index: 0, kind: input, shape index: {}]   ;;  %s389_s1 = inlined_call_operand.vmem [shape: f32[8,36], index: 1, kind: input, shape index: {}]   ;;  %s390_s2 = inlined_call_operand.vmem [shape: f32[8,1], index: 2, kind: input, shape index: {}]   ;;  %s391_s3 = inlined_call_operand.vmem [shape: f32[8,1], index: 3, kind: input, shape index: {}]   ;;  %s392_s4 = inlined_call_operand.vmem [shape: f32[8,512], index: 4, kind: output, shape index: {}]  }
   0x1   :  { %v19_v0 = vld [vmem:[%s388_s0 + $0x8] sm:$0xff]  ;;  %v18_v2 = vld [vmem:[%s388_s0] sm:$0xff]  ;;  %119 = vmatprep.mubr.f32.mxu0 %v280_v3  ;;  %190 = vmatprep.mubr.f32.mxu1 %v280_v3  ;;  %v21_v6 = vld [vmem:[%s388_s0 + $0x18] sm:$0xff] }
   0x2   :  { %v23_v1 = vld [vmem:[%s388_s0 + $0x28] sm:$0xff]  ;;  %v22_v5 = vld [vmem:[%s388_s0 + $0x20] sm:$0xff]  ;;  %v25_v7 = vld [vmem:[%s388_s0 + $0x38] sm:$0xff]  ;;  %276 = vset.pattern.permute.xlu1 %v281_v44  ;;  %277 = vset.pattern.permute.xlu0 %v281_v44 }
   0x3   :  { %v258_v4 = vpack.c.bf16 %v23_v1, %v19_v0  ;;  %v260_v8 = vpack.c.bf16 %v22_v5, %v18_v2  ;;  %v266_v9 = vpack.c.bf16 %v25_v7, %v21_v6  ;;  %v20_v10 = vld [vmem:[%s388_s0 + $0x10] sm:$0xff]  ;;  %v27_v12 = vld [vmem:[%s388_s0 + $0x48] sm:$0xff]  ;;  %v26_v15 = vld [vmem:[%s388_s0 + $0x40] sm:$0xff] }
   0x4   :  { %v24_v11 = vld [vmem:[%s388_s0 + $0x30] sm:$0xff]  ;;  %v31_v14 = vld [vmem:[%s388_s0 + $0x68] sm:$0xff]  ;;  %v30_v16 = vld [vmem:[%s388_s0 + $0x60] sm:$0xff] }
   0x5   :  { %259 = vmatprep.subr.bf16.mxu0 %v258_v4  ;;  %v268_v13 = vpack.c.bf16 %v24_v11, %v20_v10  ;;  %267 = vmatprep.subr.bf16.mxu1 %v266_v9  ;;  %v262_v17 = vpack.c.bf16 %v31_v14, %v27_v12  ;;  %v264_v18 = vpack.c.bf16 %v30_v16, %v26_v15  ;;  %v29_v19 = vld [vmem:[%s388_s0 + $0x58] sm:$0xff]  ;;  %v28_v21 = vld [vmem:[%s388_s0 + $0x50] sm:$0xff]  ;;  %v35_v25 = vld [vmem:[%s388_s0 + $0x88] sm:$0xf] }
   0x6   :  { %261 = vmatpush1.bf16.msra.mxu0 %v260_v8  ;;  %v33_v20 = vld [vmem:[%s388_s0 + $0x78] sm:$0xff]  ;;  %v32_v23 = vld [vmem:[%s388_s0 + $0x70] sm:$0xff]  ;;  %v34_v27 = vld [vmem:[%s388_s0 + $0x80] sm:$0xf] }
   0x7   :  { %269 = vmatpush1.bf16.msra.mxu1 %v268_v13  ;;  %v270_v22 = vpack.c.bf16 %v33_v20, %v29_v19  ;;  %263 = vmatprep.subr.bf16.mxu0 %v262_v17  ;;  %v272_v24 = vpack.c.bf16 %v32_v23, %v28_v21  ;;  %v37_v26 = vld [vmem:[%s388_s0 + $0x98] sm:$0xf]  ;;  %v17_v28 = vld [vmem:[%s389_s1] sm:$0xff]  ;;  %v36_v29 = vld [vmem:[%s388_s0 + $0x90] sm:$0xf] }
   0x8   :  { %v215_v52 = vld [vmem:[%s390_s2] sm:$0xff] }
   0x9   :  { %271 = vmatprep.subr.bf16.mxu1 %v270_v22  ;;  %v219_v55 = vld [vmem:[%s391_s3] sm:$0xff] }
   0xa   :  { %265 = vmatpush1.bf16.msra.mxu0 %v264_v18 }
   0xb   :  { %273 = vmatpush1.bf16.msra.mxu1 %v272_v24  ;;  %252 = vmatprep.subr.msk.mxu0 %vm42_vm0, %v35_v25 }
   0xc   :  { %255 = vmatprep.subr.msk.mxu1 %vm42_vm0, %v37_v26 }
   0xe   :  { %253 = vmatpush1.msk.msra.mxu0 %vm42_vm0, %v34_v27 }
   0xf   :  { %254 = vmatmul.mubr.msk.f32.vlgmr.msra.gmra.mrb[0].mxu0 %vm38_vm1, %v17_v28  ;;  %256 = vmatpush1.msk.msra.mxu1 %vm42_vm0, %v36_v29 }
  0x10   :  { %257 = vmatmul.mubr.msk.f32.vlgmr.msra.gmra.mrb[0].mxu1 %vm38_vm1, %v17_v28 }
  0xe2   :  { %v121_v30 = vpop.f32.mrb[0].mxu0 }
  0xe3   :  { %v203_v31 = vmul.f32 %v121_v30, %v121_v30  ;;  %v123_v32 = vpop.f32.mrb[1].mxu0  ;;  %v192_v33 = vpop.f32.mrb[0].mxu1 }
  0xe4   :  { %v197_v34 = vadd.f32 %v123_v32, %v121_v30  ;;  %v204_v35 = vmul.f32 %v123_v32, %v123_v32  ;;  %v205_v36 = vmul.f32 %v192_v33, %v192_v33  ;;  %v194_v37 = vpop.f32.mrb[1].mxu1 }
  0xe5   :  { %v206_v40 = vmul.f32 %v194_v37, %v194_v37 }
  0xe6   :  { %v207_v38 = vadd.f32 %v204_v35, %v203_v31  ;;  %v198_v39 = vadd.f32 %v197_v34, %v192_v33 }
  0xe8   :  { %v199_v41 = vadd.f32 %v198_v39, %v194_v37  ;;  %v208_v42 = vadd.f32 %v207_v38, %v205_v36 }
  0xea   :  { %200 = vadd.xlane.f32.xlu0 %v199_v41  ;;  %v209_v43 = vadd.f32 %v208_v42, %v206_v40 }
  0xee   :  { %210 = vadd.xlane.f32.xlu0 %v209_v43 }
 0x177   :  { %v201_v45 = vpop.xlane.xlu0 %200 }
 0x178   :  { %v202_v46 = vmul.f32 0.001953125, %v201_v45 }
 0x17a   :  { %v213_v48 = vmul.f32 %v202_v46, %v202_v46 }
 0x17b   :  { %v211_v47 = vpop.xlane.xlu0 %210 }
 0x17c   :  { %v212_v49 = vmul.f32 0.001953125, %v211_v47 }
 0x17e   :  { %v214_v50 = vsub.f32 %v212_v49, %v213_v48 }
 0x180   :  { %v216_v51 = vadd.f32 1e-05, %v214_v50 }
 0x182   :  { %278 = vrsqrt.f32 %v216_v51 }
 0x18c   :  { %v279_v53 = vpop.eup %278 }
 0x18d   :  { %v218_v54 = vmul.f32 %v279_v53, %v215_v52 }
 0x18f   :  { %224 = vperm.xlu1 %276, %v218_v54   ;;  %v220_v56 = vmul.f32 %v218_v54, %v202_v46 }
 0x191   :  { %v221_v57 = vsub.f32 %v219_v55, %v220_v56 }
 0x193   :  { %233 = vperm.xlu1 %276, %v221_v57  }
 0x20e   :  { %v225_v58 = vpop.permute.xlu1 %224 }
 0x20f   :  { %v227_v59 = vmul.f32 %v225_v58, %v121_v30  ;;  %v228_v60 = vmul.f32 %v225_v58, %v123_v32  ;;  %v229_v61 = vmul.f32 %v225_v58, %v192_v33  ;;  %v230_v62 = vmul.f32 %v225_v58, %v194_v37 }
 0x212   :  { %v234_v63 = vpop.permute.xlu1 %233 }
 0x213   :  { %v236_v0 = vadd.f32 %v234_v63, %v227_v59  ;;  %v237_v1 = vadd.f32 %v234_v63, %v228_v60  ;;  %v238_v2 = vadd.f32 %v234_v63, %v229_v61  ;;  %v239_v3 = vadd.f32 %v234_v63, %v230_v62 }
 0x215   :  { %v240_v4 = vmax.f32 %v236_v0, 0.0  ;;  %v241_v5 = vmax.f32 %v237_v1, 0.0  ;;  %v242_v6 = vmax.f32 %v238_v2, 0.0  ;;  %v243_v7 = vmax.f32 %v239_v3, 0.0 }
 0x217   :  { %244 = vst [vmem:[%s392_s4] sm:$0xff] %v240_v4  ;;  %245 = vst [vmem:[%s392_s4 + $0x8] sm:$0xff] %v241_v5 }
 0x218   :  { %246 = vst [vmem:[%s392_s4 + $0x10] sm:$0xff] %v242_v6  ;;  %247 = vst [vmem:[%s392_s4 + $0x18] sm:$0xff] %v243_v7 }

</bundles_post_ra>
